<compile_context>
chip_gen: v5e
topology: v5e:2x2
jax: 0.10.0
libtpu: 0.0.40
codegen_flags: <defaults>
</compile_context>

<pallas_src>
import jax
import jax.numpy as jnp
from jax import lax
from jax.experimental import pallas as pl
from jax.experimental.pallas import tpu as pltpu

_LANES = 128


def _round_up(x, m):
    return ((x + m - 1) // m) * m


def _prod_over_rows(x):
    """Product over axis 0 via a pairwise multiply tree.

    Uses only static sublane slices and full-width VPU multiplies (does not
    rely on a multiply-reduction lowering).  Handles any row count.
    """
    while x.shape[0] > 1:
        n = x.shape[0]
        half = n // 2
        y = x[:half] * x[half:2 * half]
        if n % 2:
            y = jnp.concatenate([y, x[2 * half:n]], axis=0)
        x = y
    return x  # [1, T]


def _detector_kernel(g_ref, mask_ref, w_ref, beta_ref, out_ref, acc_ref):
    """One (batch b, sequence-split c, sequence-tile t) grid step.

    g_ref:    [1, T_TILE, D]   producer dtype (bf16 / f32)
    mask_ref: [1, 1, T_TILE]   f32
    w_ref:    [2D, D]          rows 0:D  = strictly-lower-triangular delta
                               rows D:2D = identity (transposes g on the MXU);
                               same dtype as g
    beta_ref: [D, 1]           f32
    out_ref:  [1, 1, 128]      lane-dense partial relative-surprisal sum
    acc_ref:  [1, 1] f32       per-(batch, split) accumulator
    """
    t = pl.program_id(2)

    @pl.when(t == 0)
    def _():
        acc_ref[...] = jnp.zeros_like(acc_ref)

    g = g_ref[0]                              # [T_TILE, D], MXU dtype
    m = mask_ref[0]                           # [1, T_TILE], f32
    w = w_ref[...]                            # [2D, D],    MXU dtype
    beta_col = beta_ref[...]                  # [D, 1],     f32
    d = beta_col.shape[0]

    # One MXU call: rows 0:D give logits (pre-bias), rows D:2D give g^T; both
    # land in the lane-dense [D, T_TILE] layout (T_TILE multiple of 128), f32.
    res = lax.dot_general(
        w, g,
        dimension_numbers=(((1,), (1,)), ((), ())),
        preferred_element_type=jnp.float32,
    )                                         # [2D, T_TILE] f32
    logits = res[:d] + beta_col               # [D, T_TILE]
    g_t = res[d:]                             # [D, T_TILE]

    # sigmoid via tanh: one EUP op per element instead of exp + reciprocal.
    p_two = 0.5 * (jnp.tanh(0.5 * logits) + 1.0)
    # 2*lik_wm = (g + 0.5)*p2 + (1 - p2) = 1 + (g - 0.5)*p2, in (0.5, 1.5) for
    # g in [0, 1], so the reference's 1e-30 clamp never binds and
    #   sum_d [log(max(lik_wm,1e-30)) - log(0.5)] == log(prod_d (1+(g-0.5)p2)).
    f = 1.0 + (g_t - 0.5) * p_two             # [D, T_TILE]
    prod = _prod_over_rows(f)                 # [1, T_TILE]  (VPU/XLU only)
    per_tok = jnp.log(jnp.maximum(prod, 1e-30))   # one EUP log per token
    acc_ref[...] += jnp.sum(per_tok * m, axis=1, keepdims=True)

    @pl.when(t == pl.num_programs(2) - 1)
    def _():
        out_ref[...] = jnp.broadcast_to(acc_ref[...][:, :, None], (1, 1, _LANES))


def bayesian_detector_forward(g_values, mask, delta, beta, prior, *,
                              t_tile=4096, seq_splits=None):
    """P(watermarked | g_values).

    g_values: [B, T, D]  (streamed in its own dtype -- pass bf16 from the
              producer to halve HBM traffic; integer inputs are upcast to bf16)
    mask:     [B, T]
    delta:    reshapable to [D, D]; beta: reshapable to [D]; prior: scalar-like
    Returns float32 [B].
    """
    B, T, D = g_values.shape

    if not jnp.issubdtype(g_values.dtype, jnp.floating):
        g_values = g_values.astype(jnp.bfloat16)
    mxu_dtype = g_values.dtype

    # Sequence tile: multiple of 128 lanes, as large as the (padded) sequence.
    t_tile = max(_LANES, (int(t_tile) // _LANES) * _LANES)
    t_tile = min(t_tile, _round_up(T, _LANES))
    nt = -(-T // t_tile)

    # 2-way sequence split keeps both v7x TensorCores busy at small batch;
    # on single-TC chips it is the same number of (sequential) grid steps.
    if seq_splits is None:
        seq_splits = 2 if (B <= 2 and nt >= 2) else 1
    nc = max(1, int(seq_splits))
    nt = _round_up(nt, nc)
    T_pad = nt * t_tile
    ntps = nt // nc                           # sequence tiles per split

    if T_pad != T:                            # padded tokens get mask=0
        g_values = jnp.pad(g_values, ((0, 0), (0, T_pad - T), (0, 0)))
        mask = jnp.pad(mask, ((0, 0), (0, T_pad - T)))
    mask3 = mask.reshape(B, 1, T_pad).astype(jnp.float32)

    delta2d = jnp.asarray(delta, jnp.float32).reshape(D, D)
    tri = jnp.tril(jnp.ones((D, D), jnp.float32), k=-1)
    w = jnp.concatenate([delta2d * tri, jnp.eye(D, dtype=jnp.float32)],
                        axis=0).astype(mxu_dtype)                    # [2D, D]
    beta_col = jnp.asarray(beta, jnp.float32).reshape(D, 1)

    partial = pl.pallas_call(
        _detector_kernel,
        out_shape=jax.ShapeDtypeStruct((B, nc, _LANES), jnp.float32),
        grid_spec=pltpu.PrefetchScalarGridSpec(
            num_scalar_prefetch=0,
            grid=(B, nc, ntps),
            in_specs=[
                pl.BlockSpec((1, t_tile, D),
                             lambda b, c, t: (b, c * ntps + t, 0)),      # g
                pl.BlockSpec((1, 1, t_tile),
                             lambda b, c, t: (b, 0, c * ntps + t)),      # mask
                pl.BlockSpec((2 * D, D), lambda b, c, t: (0, 0)),        # [tril(delta); I]
                pl.BlockSpec((D, 1), lambda b, c, t: (0, 0)),            # beta
            ],
            out_specs=pl.BlockSpec((1, 1, _LANES), lambda b, c, t: (b, c, 0)),
            scratch_shapes=[pltpu.VMEM((1, 1), jnp.float32)],
        ),
        compiler_params=pltpu.CompilerParams(
            dimension_semantics=("parallel", "parallel", "arbitrary"),
            vmem_limit_bytes=32 * 1024 * 1024,
        ),
    )(g_values, mask3, w, beta_col)

    rs_like = jnp.sum(partial[:, :, 0], axis=1)                         # [B]
    p = jnp.clip(jnp.asarray(prior, jnp.float32).reshape(()), 1e-5, 1.0 - 1e-5)
    return jax.nn.sigmoid(jnp.log(p) - jnp.log(1.0 - p) + rs_like)


def reference_forward(g_values, mask, delta, beta, prior):
    """Plain-JAX reference mirroring the PyTorch module exactly."""
    B, T, D = g_values.shape
    tri = jnp.tril(jnp.ones((D, D), jnp.float32), k=-1)
    masked_delta = delta * tri
    logits = jnp.einsum("btj,ij->bti", g_values, masked_delta) + beta.reshape(1, 1, D)
    p2 = jax.nn.sigmoid(logits)
    lw = 0.5 * ((g_values + 0.5) * p2 + (1.0 - p2))
    log_odds = jnp.log(jnp.maximum(lw, 1e-30)) - jnp.log(0.5)
    rs_like = jnp.sum(log_odds * mask[:, :, None], axis=(1, 2))
    p = jnp.clip(prior.reshape(()), 1e-5, 1.0 - 1e-5)
    rs_prior = jnp.log(p) - jnp.log(1.0 - p)
    return jax.nn.sigmoid(rs_prior + rs_like)


if __name__ == "__main__":
    D = 32          # watermarking_depth
    baserate = 0.5

    key = jax.random.PRNGKey(0)
    k_g, k_m, k_beta, k_delta, k_g2, k_m2 = jax.random.split(key, 6)

    # Deterministic parameter init (mirrors the PyTorch __init__ shapes).
    beta = (-2.5 + 0.001 * jax.random.normal(k_beta, (1, 1, D))).astype(jnp.float32)
    delta = (0.001 * jax.random.normal(k_delta, (1, 1, D, D))).astype(jnp.float32)
    prior = jnp.array([baserate], dtype=jnp.float32)

    # --- Test 1: small shapes, f32 streaming, tight tolerance ---------------
    B, T = 2, 8
    g_values = jax.random.bernoulli(k_g, 0.5, (B, T, D)).astype(jnp.float32)
    mask = jax.random.bernoulli(k_m, 0.8, (B, T)).astype(jnp.float32)

    out = bayesian_detector_forward(g_values, mask, delta[0, 0], beta, prior)
    out = jax.block_until_ready(out)
    ref = reference_forward(g_values, mask, delta[0, 0], beta, prior)
    assert out.shape == (B,)
    assert jnp.allclose(out, ref, atol=1e-5), (out, ref)

    # --- Test 2: longer sequence, bf16 streaming, 2-way sequence split ------
    B2, T2 = 2, 300
    g2 = jax.random.bernoulli(k_g2, 0.5, (B2, T2, D)).astype(jnp.bfloat16)
    mask2 = jax.random.bernoulli(k_m2, 0.8, (B2, T2)).astype(jnp.float32)

    out2 = bayesian_detector_forward(g2, mask2, delta[0, 0], beta, prior, t_tile=128)
    out2 = jax.block_until_ready(out2)
    # Reference with the same bf16-quantized weights/inputs (matches modulo f32
    # summation order and the tanh / log-of-product rewrites).
    delta_q = delta[0, 0].astype(jnp.bfloat16).astype(jnp.float32)
    ref2 = reference_forward(g2.astype(jnp.float32), mask2, delta_q, beta, prior)
    assert out2.shape == (B2,)
    assert jnp.allclose(out2, ref2, atol=1e-4), (out2, ref2)

    print("KERNEL_OK")
</pallas_src>

<mosaic_0001>
module attributes {stable_mosaic.version = 11 : i64} {
  func.func @_detector_kernel(%arg0: i32, %arg1: i32, %arg2: i32, %arg3: memref<1x128x32xf32, #tpu.memory_space<vmem>>, %arg4: memref<1x1x128xf32, #tpu.memory_space<vmem>>, %arg5: memref<64x32xf32, #tpu.memory_space<vmem>>, %arg6: memref<32x1xf32, #tpu.memory_space<vmem>>, %arg7: memref<1x1x128xf32, #tpu.memory_space<vmem>>, %arg8: memref<1x1xf32, #tpu.memory_space<vmem>>) attributes {dimension_semantics = [#tpu.dimension_semantics<parallel>, #tpu.dimension_semantics<parallel>, #tpu.dimension_semantics<arbitrary>], iteration_bounds = array<i64: 2, 1, 1>, scalar_prefetch = 0 : i64, scratch_operands = 1 : i64, tpu.core_type = #tpu.core_type<tc>, window_params = [{transform_indices = @transform_0, window_bounds = array<i64: 1, 128, 32>}, {transform_indices = @transform_1, window_bounds = array<i64: 1, 1, 128>}, {pipeline_mode = #tpu.pipeline_mode<synchronous>, transform_indices = @transform_2, window_bounds = array<i64: 64, 32>}, {pipeline_mode = #tpu.pipeline_mode<synchronous>, transform_indices = @transform_3, window_bounds = array<i64: 32, 1>}, {transform_indices = @transform_4, window_bounds = array<i64: 1, 1, 128>}]} {
    %c0_i32 = arith.constant 0 : i32
    %0 = arith.cmpi eq, %arg2, %c0_i32 : i32
    %1 = arith.extui %0 : i1 to i32
    %c0_i32_0 = arith.constant 0 : i32
    %2 = arith.cmpi ne, %1, %c0_i32_0 : i32
    scf.if %2 {
      %cst_23 = arith.constant 0.000000e+00 : f32
      %53 = vector.broadcast %cst_23 : f32 to vector<1x1xf32>
      %c0_24 = arith.constant 0 : index
      %c0_25 = arith.constant 0 : index
      %54 = vector.load %arg8[%c0_24, %c0_25] : memref<1x1xf32, #tpu.memory_space<vmem>>, vector<1x1xf32>
      tpu.vector_store %arg8[%c0_24, %c0_25], %53 {strides = array<i32>} : memref<1x1xf32, #tpu.memory_space<vmem>>, vector<1x1xf32>,
    } else {
    }
    %c0 = arith.constant 0 : index
    %c0_1 = arith.constant 0 : index
    %c0_2 = arith.constant 0 : index
    %3 = vector.load %arg3[%c0, %c0_1, %c0_2] : memref<1x128x32xf32, #tpu.memory_space<vmem>>, vector<1x128x32xf32>
    %4 = vector.shape_cast %3 : vector<1x128x32xf32> to vector<128x32xf32>
    %c0_3 = arith.constant 0 : index
    %c0_4 = arith.constant 0 : index
    %c0_5 = arith.constant 0 : index
    %5 = vector.load %arg4[%c0_3, %c0_4, %c0_5] : memref<1x1x128xf32, #tpu.memory_space<vmem>>, vector<1x1x128xf32>
    %6 = vector.shape_cast %5 : vector<1x1x128xf32> to vector<1x128xf32>
    %c0_6 = arith.constant 0 : index
    %c0_7 = arith.constant 0 : index
    %7 = vector.load %arg5[%c0_6, %c0_7] : memref<64x32xf32, #tpu.memory_space<vmem>>, vector<64x32xf32>
    %c0_8 = arith.constant 0 : index
    %c0_9 = arith.constant 0 : index
    %8 = vector.load %arg6[%c0_8, %c0_9] : memref<32x1xf32, #tpu.memory_space<vmem>>, vector<32x1xf32>
    %cst = arith.constant dense<0.000000e+00> : vector<64x128xf32>
    %9 = tpu.matmul %7, %4, %cst {dimension_numbers = #tpu.dot_dimension_numbers<[1], [1], [0], [0], [0, 0, 1, 0], [], []>} : vector<64x32xf32>, vector<128x32xf32>, vector<64x128xf32> -> vector<64x128xf32>
    %10 = vector.extract_strided_slice %9 {offsets = [0, 0], sizes = [32, 128], strides = [1, 1]} : vector<64x128xf32> to vector<32x128xf32>
    %11 = vector.broadcast %8 : vector<32x1xf32> to vector<32x128xf32>
    %12 = arith.addf %10, %11 : vector<32x128xf32>
    %13 = vector.extract_strided_slice %9 {offsets = [32, 0], sizes = [32, 128], strides = [1, 1]} : vector<64x128xf32> to vector<32x128xf32>
    %cst_10 = arith.constant 5.000000e-01 : f32
    %14 = vector.broadcast %cst_10 : f32 to vector<32x128xf32>
    %15 = arith.mulf %14, %12 : vector<32x128xf32>
    %16 = math.tanh %15 : vector<32x128xf32>
    %cst_11 = arith.constant 1.000000e+00 : f32
    %17 = vector.broadcast %cst_11 : f32 to vector<32x128xf32>
    %18 = arith.addf %16, %17 : vector<32x128xf32>
    %cst_12 = arith.constant 5.000000e-01 : f32
    %19 = vector.broadcast %cst_12 : f32 to vector<32x128xf32>
    %20 = arith.mulf %19, %18 : vector<32x128xf32>
    %cst_13 = arith.constant 5.000000e-01 : f32
    %21 = vector.broadcast %cst_13 : f32 to vector<32x128xf32>
    %22 = arith.subf %13, %21 : vector<32x128xf32>
    %23 = arith.mulf %22, %20 : vector<32x128xf32>
    %cst_14 = arith.constant 1.000000e+00 : f32
    %24 = vector.broadcast %cst_14 : f32 to vector<32x128xf32>
    %25 = arith.addf %24, %23 : vector<32x128xf32>
    %26 = vector.extract_strided_slice %25 {offsets = [0, 0], sizes = [16, 128], strides = [1, 1]} : vector<32x128xf32> to vector<16x128xf32>
    %27 = vector.extract_strided_slice %25 {offsets = [16, 0], sizes = [16, 128], strides = [1, 1]} : vector<32x128xf32> to vector<16x128xf32>
    %28 = arith.mulf %26, %27 : vector<16x128xf32>
    %29 = vector.extract_strided_slice %28 {offsets = [0, 0], sizes = [8, 128], strides = [1, 1]} : vector<16x128xf32> to vector<8x128xf32>
    %30 = vector.extract_strided_slice %28 {offsets = [8, 0], sizes = [8, 128], strides = [1, 1]} : vector<16x128xf32> to vector<8x128xf32>
    %31 = arith.mulf %29, %30 : vector<8x128xf32>
    %32 = vector.extract_strided_slice %31 {offsets = [0, 0], sizes = [4, 128], strides = [1, 1]} : vector<8x128xf32> to vector<4x128xf32>
    %33 = vector.extract_strided_slice %31 {offsets = [4, 0], sizes = [4, 128], strides = [1, 1]} : vector<8x128xf32> to vector<4x128xf32>
    %34 = arith.mulf %32, %33 : vector<4x128xf32>
    %35 = vector.extract_strided_slice %34 {offsets = [0, 0], sizes = [2, 128], strides = [1, 1]} : vector<4x128xf32> to vector<2x128xf32>
    %36 = vector.extract_strided_slice %34 {offsets = [2, 0], sizes = [2, 128], strides = [1, 1]} : vector<4x128xf32> to vector<2x128xf32>
    %37 = arith.mulf %35, %36 : vector<2x128xf32>
    %38 = vector.extract_strided_slice %37 {offsets = [0, 0], sizes = [1, 128], strides = [1, 1]} : vector<2x128xf32> to vector<1x128xf32>
    %39 = vector.extract_strided_slice %37 {offsets = [1, 0], sizes = [1, 128], strides = [1, 1]} : vector<2x128xf32> to vector<1x128xf32>
    %40 = arith.mulf %38, %39 : vector<1x128xf32>
    %cst_15 = arith.constant 1.000000e-30 : f32
    %41 = vector.broadcast %cst_15 : f32 to vector<1x128xf32>
    %42 = arith.maximumf %40, %41 : vector<1x128xf32>
    %43 = math.log %42 : vector<1x128xf32>
    %c0_16 = arith.constant 0 : index
    %c0_17 = arith.constant 0 : index
    %44 = vector.load %arg8[%c0_16, %c0_17] : memref<1x1xf32, #tpu.memory_space<vmem>>, vector<1x1xf32>
    %45 = arith.mulf %43, %6 : vector<1x128xf32>
    %cst_18 = arith.constant dense<0.000000e+00> : vector<1xf32>
    %46 = vector.multi_reduction <add>, %45, %cst_18 [1] : vector<1x128xf32> to vector<1xf32>
    %47 = vector.shape_cast %46 : vector<1xf32> to vector<1x1xf32>
    %48 = arith.addf %44, %47 : vector<1x1xf32>
    %c0_19 = arith.constant 0 : index
    %c0_20 = arith.constant 0 : index
    %49 = vector.load %arg8[%c0_19, %c0_20] : memref<1x1xf32, #tpu.memory_space<vmem>>, vector<1x1xf32>
    tpu.vector_store %arg8[%c0_19, %c0_20], %48 {strides = array<i32>} : memref<1x1xf32, #tpu.memory_space<vmem>>, vector<1x1xf32>,
    %c0_i32_21 = arith.constant 0 : i32
    %50 = arith.cmpi eq, %arg2, %c0_i32_21 : i32
    %51 = arith.extui %50 : i1 to i32
    %c0_i32_22 = arith.constant 0 : i32
    %52 = arith.cmpi ne, %51, %c0_i32_22 : i32
    scf.if %52 {
      %c0_23 = arith.constant 0 : index
      %c0_24 = arith.constant 0 : index
      %53 = vector.load %arg8[%c0_23, %c0_24] : memref<1x1xf32, #tpu.memory_space<vmem>>, vector<1x1xf32>
      %54 = vector.shape_cast %53 : vector<1x1xf32> to vector<1x1x1xf32>
      %55 = vector.shape_cast %54 : vector<1x1x1xf32> to vector<1x1x1xf32>
      %56 = vector.broadcast %55 : vector<1x1x1xf32> to vector<1x1x128xf32>
      %c0_25 = arith.constant 0 : index
      %c0_26 = arith.constant 0 : index
      %c0_27 = arith.constant 0 : index
      %57 = vector.load %arg7[%c0_25, %c0_26, %c0_27] : memref<1x1x128xf32, #tpu.memory_space<vmem>>, vector<1x1x128xf32>
      tpu.vector_store %arg7[%c0_25, %c0_26, %c0_27], %56 {strides = array<i32>} : memref<1x1x128xf32, #tpu.memory_space<vmem>>, vector<1x1x128xf32>,
    } else {
    }
    return
  }
  func.func @transform_0(%arg0: i32, %arg1: i32, %arg2: i32) -> (i32, i32, i32) {
    %c1_i32 = arith.constant 1 : i32
    %0 = arith.muli %arg1, %c1_i32 : i32
    %1 = arith.addi %0, %arg2 : i32
    %c0_i32 = arith.constant 0 : i32
    %c0_i32_0 = arith.constant 0 : i32
    return %arg0, %1, %c0_i32 : i32, i32, i32
  }
  func.func @transform_1(%arg0: i32, %arg1: i32, %arg2: i32) -> (i32, i32, i32) {
    %c1_i32 = arith.constant 1 : i32
    %0 = arith.muli %arg1, %c1_i32 : i32
    %1 = arith.addi %0, %arg2 : i32
    %c0_i32 = arith.constant 0 : i32
    %c0_i32_0 = arith.constant 0 : i32
    return %arg0, %c0_i32, %1 : i32, i32, i32
  }
  func.func @transform_2(%arg0: i32, %arg1: i32, %arg2: i32) -> (i32, i32) {
    %c0_i32 = arith.constant 0 : i32
    %c0_i32_0 = arith.constant 0 : i32
    %c0_i32_1 = arith.constant 0 : i32
    return %c0_i32, %c0_i32_0 : i32, i32
  }
  func.func @transform_3(%arg0: i32, %arg1: i32, %arg2: i32) -> (i32, i32) {
    %c0_i32 = arith.constant 0 : i32
    %c0_i32_0 = arith.constant 0 : i32
    %c0_i32_1 = arith.constant 0 : i32
    return %c0_i32, %c0_i32_0 : i32, i32
  }
  func.func @transform_4(%arg0: i32, %arg1: i32, %arg2: i32) -> (i32, i32, i32) {
    %c0_i32 = arith.constant 0 : i32
    %c0_i32_0 = arith.constant 0 : i32
    return %arg0, %arg1, %c0_i32 : i32, i32, i32
  }
}

</mosaic_0001>

<bundles_post_ra>
// kernel: tpu_custom_call.1
= control target key start
LH: loop header
LB: loop body
LE: loop exit
PB: predicated region body
PF: predicated region fallthrough
CT: control target
= control target key end

     0   :  { %9 = vsyncpa [#allocation4], 0  ;;  %s1104_s0 = inlined_call_operand.vmem [shape: f32[2,128,32], index: 0, kind: input, shape index: {}]   ;;  %s1105_s1 = inlined_call_operand.vmem [shape: f32[2,1,128], index: 1, kind: input, shape index: {}]   ;;  %s1106_s2 = inlined_call_operand.vmem [shape: f32[64,32], index: 2, kind: input, shape index: {}]   ;;  %s1107_s3 = inlined_call_operand.vmem [shape: f32[32,1], index: 3, kind: input, shape index: {}]   ;;  %s1108_s4 = inlined_call_operand.hbm [shape: f32[2,1,128], index: 4, kind: output, shape index: {}]  }
   0x1   :  { %11 = vsyncpa [#allocation4 + $0x1], 0  ;;  %s872_s15 = smov 0   ;;  %s874_s16 = smov 0  }
   0x2   :  { %s876_s17 = smov 0   ;;  %s878_s18 = smov 0  }
   0x3   :  { %s880_s19 = smov 0   ;;  %s882_s20 = smov 0  }
   0x4 LB: > { %s609_s21 = sadd.s32 4294967295, %s843_s20   ;;  %s610_s22 = sadd.s32 4294967294, %s843_s20   ;;  %s843_s20 = sphi %s882_s20, %s17_s20   ;;  %s839_s19 = sphi %s880_s19, %s1115_s19   ;;  %s835_s18 = sphi %s878_s18, %s1114_s18   ;;  %s831_s17 = sphi %s876_s17, %s1113_s17   ;;  %s827_s16 = sphi %s874_s16, %s1112_s16   ;;  %s823_s15 = sphi %s872_s15, %s1111_s15  }
   0x5   : > { %s36_s23 = sadd.s32 1, %s839_s19  ;;  %s147_s24 = sadd.s32 1, %s831_s17 }
   0x6   : > { %p38_p0 = scmp.ge.s32.totalorder %s36_s23, 2  ;;  %p157_p1 = scmp.ne.s32.totalorder %s831_s17, %s827_s16 }
   0x7   : > { %p158_p2 = scmp.eq.s32.totalorder %s609_s21, 1  ;;  %p163_p3 = scmp.ne.s32.totalorder %s827_s16, %s823_s15 }
   0x8   : > { %s1117_s23 = smov (%p38_p0, %s36_s23), 0  ;;  %p164_p5 = scmp.eq.s32.totalorder %s610_s22, 1 }
   0x9   : > { %p912_p4 = por %p158_p2, %p157_p1  ;;  %s142_s26 = ssub.s32 %s839_s19, %s1117_s23 }
   0xa   : > { %p613_p6 = scmp.ge.s32.totalorder %s843_s20, 1  ;;  %p145_p7 = scmp.eq.s32.totalorder %s142_s26, 0 }
   0xb   : > { %p919_p8 = por %p164_p5, %p163_p3  ;;  %p214_p9 = scmp.lt.s32.totalorder %s843_s20, 3 }
   0xc   : > { %s925_s28 = scalar_select %p145_p7, %s831_s17, %s147_s24  }
   0xd   : > { %p215_p10 = pnand %p613_p6, %p214_p9 }
   0xe   : > { %p253_p11 = scmp.lt.s32.totalorder (!%p215_p10), %s835_s18, 1  ;;  %s249_s5 = sand.u32 (!%p215_p10), 1, %s827_s16  }
   0xf   : > { %218 = sbr.rel (%p215_p10) target bundleno = 494 (0x1ee), region = 36  ;;  %s250_s8 = scalar_lea.vmem (!%p215_p10), [#allocation3], %s249_s5 }
  0x10   : > { %s522_s9 = sshll.u32 (!%p215_p10), %s250_s8, 4  ;;  %s511_s11 = scalar_lea.sflag (!%p215_p10), [#allocation4], %s249_s5  ;;  %s523_s9 = int_to_ptr.vmem [resolvable:$true] %s522_s9 }
  0x14   : > { %s929_s29 = scalar_select %p253_p11, %s835_s18, 1  ;;  %vm306_vm0 = vcmask 261120   ;;  %v304_v9 = vld [vmem:[%s1107_s3 + $0x10] sm:$0xff]  ;;  %v302_v10 = vld [vmem:[%s1107_s3] sm:$0xff]  ;;  %v845_v12 = vmov 0   ;;  %v305_v14 = vld [vmem:[%s1107_s3 + $0x18] sm:$0xff] }
  0x15   : > { %753 = vset.pattern.permute.xlu1 %v845_v12  ;;  %752 = vset.pattern.permute.xlu0 %v845_v12  ;;  %v303_v15 = vld [vmem:[%s1107_s3 + $0x8] sm:$0xff]  ;;  %v294_v21 = vld [vmem:[%s1106_s2] sm:$0xff]  ;;  %v296_v22 = vld [vmem:[%s1106_s2 + $0x10] sm:$0xff]  ;;  %vm275_vm1 = vcmask 0   ;;  %vm492_vm2 = vcmask 1040384  }
  0x16   : > { %s646_s30 = sshll.u32 %s929_s29, 7  ;;  %432 = vperm.xlu1 %753, %v304_v9   ;;  %422 = vperm.xlu0 %752, %v302_v10   ;;  %v298_v23 = vld [vmem:[%s1106_s2 + $0x20] sm:$0xff]  ;;  %v300_v24 = vld [vmem:[%s1106_s2 + $0x30] sm:$0xff]  ;;  %v295_v25 = vld [vmem:[%s1106_s2 + $0x8] sm:$0xff]  ;;  %v846_v9 = vmov 0.0  }
  0x17   : > { %s935_s7 = scalar_lea.vmem %s1104_s0, %s646_s30  ;;  %754 = vset.pattern.permute.xlu2 %v845_v12  ;;  %v297_v26 = vld [vmem:[%s1106_s2 + $0x18] sm:$0xff]  ;;  %v299_v27 = vld [vmem:[%s1106_s2 + $0x28] sm:$0xff]  ;;  %276 = vst.msk [vmem:[#allocation2] sm:$0x1] %vm275_vm1, %v846_v9  ;;  %s269_s30 = scalar_lea.vmem %s1105_s1, %s929_s29 }
  0x18   : > { %v292_v0 = vld [vmem:[%s935_s7 + $0x78] sm:$0xff]  ;;  %v291_v1 = vld [vmem:[%s935_s7 + $0x70] sm:$0xff]  ;;  %v290_v2 = vld [vmem:[%s935_s7 + $0x68] sm:$0xff]  ;;  %s520_s29 = scalar_lea.hbm %s1108_s4, %s835_s18  ;;  %s785_s18 = scalar_lea.hbm %s1108_s4, 2 }
  0x19   : > { %616 = vmatpush.xpose.msk.msra.mxu0 %vm306_vm0, %v292_v0  ;;  %647 = vmatpush.xpose.msk.msra.mxu1 %vm306_vm0, %v292_v0  ;;  %v289_v3 = vld [vmem:[%s935_s7 + $0x60] sm:$0xff]  ;;  %v288_v4 = vld [vmem:[%s935_s7 + $0x58] sm:$0xff]  ;;  %v287_v5 = vld [vmem:[%s935_s7 + $0x50] sm:$0xff]  ;;  %s524_s10 = sshll.u32 %s520_s29, 4  ;;  %s525_s10 = int_to_ptr.hbm [resolvable:$true] %s524_s10 }
  0x1a   : > { %648 = vmatpush.xpose.msk.msra.mxu2 %vm306_vm0, %v292_v0  ;;  %649 = vmatpush.xpose.msk.msra.mxu3 %vm306_vm0, %v292_v0  ;;  %v286_v6 = vld [vmem:[%s935_s7 + $0x48] sm:$0xff]  ;;  %v285_v7 = vld [vmem:[%s935_s7 + $0x40] sm:$0xff]  ;;  %v284_v8 = vld [vmem:[%s935_s7 + $0x38] sm:$0xff]  ;;  %s779_s12 = sshra.s32 %s525_s10, 4  ;;  %s780_s12 = int_to_ptr.hbm [resolvable:$true] %s779_s12 }
  0x1b   : > { %v283_v11 = vld [vmem:[%s935_s7 + $0x30] sm:$0xff]  ;;  %v282_v13 = vld [vmem:[%s935_s7 + $0x28] sm:$0xff]  ;;  %v281_v16 = vld [vmem:[%s935_s7 + $0x20] sm:$0xff]  ;;  %s781_s13 = scalar_lea.hbm %s780_s12, 1  ;;  %p786_p1 = scmp.lt.s32.totalorder %s780_s12, %s1108_s4 }
  0x1c   : > { %v280_v17 = vld [vmem:[%s935_s7 + $0x18] sm:$0xff]  ;;  %v279_v18 = vld [vmem:[%s935_s7 + $0x10] sm:$0xff]  ;;  %v278_v19 = vld [vmem:[%s935_s7 + $0x8] sm:$0xff]  ;;  %p782_p12 = scmp.ne.s32.totalorder %s780_s12, %s781_s13  ;;  %p787_p2 = scmp.lt.s32.totalorder %s785_s18, %s781_s13 }
  0x1d   : > { %617 = vmatpush.xpose.msk.msra.mxu0 %vm306_vm0, %v291_v1  ;;  %650 = vmatpush.xpose.msk.msra.mxu1 %vm306_vm0, %v291_v1  ;;  %v277_v20 = vld [vmem:[%s935_s7] sm:$0xff]  ;;  %v301_v28 = vld [vmem:[%s1106_s2 + $0x38] sm:$0xff] }
  0x1e   : > { %651 = vmatpush.xpose.msk.msra.mxu2 %vm306_vm0, %v291_v1  ;;  %652 = vmatpush.xpose.msk.msra.mxu3 %vm306_vm0, %v291_v1  ;;  %p783_p13 = pnand %p782_p12, %p912_p4  ;;  %p788_p3 = por %p787_p2, %p786_p1 }
  0x1f   : > { %437 = vperm.xlu1 %753, %v305_v14   ;;  %427 = vperm.xlu0 %752, %v303_v15  }
  0x20   : > { %p784_p0 = pneg %p783_p13 }
  0x21   : > { %618 = vmatpush.xpose.msk.msra.mxu0 %vm306_vm0, %v290_v2  ;;  %653 = vmatpush.xpose.msk.msra.mxu1 %vm306_vm0, %v290_v2 }
  0x22   : > { %654 = vmatpush.xpose.msk.msra.mxu2 %vm306_vm0, %v290_v2  ;;  %655 = vmatpush.xpose.msk.msra.mxu3 %vm306_vm0, %v290_v2  ;;  %p789_p5 = pnand %p788_p3, %p784_p0 }
  0x25   : > { %619 = vmatpush.xpose.msk.msra.mxu0 %vm306_vm0, %v289_v3  ;;  %656 = vmatpush.xpose.msk.msra.mxu1 %vm306_vm0, %v289_v3 }
  0x26   : > { %657 = vmatpush.xpose.msk.msra.mxu2 %vm306_vm0, %v289_v3  ;;  %658 = vmatpush.xpose.msk.msra.mxu3 %vm306_vm0, %v289_v3 }
  0x29   : > { %620 = vmatpush.xpose.msk.msra.mxu0 %vm306_vm0, %v288_v4  ;;  %659 = vmatpush.xpose.msk.msra.mxu1 %vm306_vm0, %v288_v4 }
  0x2a   : > { %660 = vmatpush.xpose.msk.msra.mxu2 %vm306_vm0, %v288_v4  ;;  %661 = vmatpush.xpose.msk.msra.mxu3 %vm306_vm0, %v288_v4 }
  0x2d   : > { %621 = vmatpush.xpose.msk.msra.mxu0 %vm306_vm0, %v287_v5  ;;  %662 = vmatpush.xpose.msk.msra.mxu1 %vm306_vm0, %v287_v5 }
  0x2e   : > { %663 = vmatpush.xpose.msk.msra.mxu2 %vm306_vm0, %v287_v5  ;;  %664 = vmatpush.xpose.msk.msra.mxu3 %vm306_vm0, %v287_v5 }
  0x31   : > { %622 = vmatpush.xpose.msk.msra.mxu0 %vm306_vm0, %v286_v6  ;;  %665 = vmatpush.xpose.msk.msra.mxu1 %vm306_vm0, %v286_v6 }
  0x32   : > { %666 = vmatpush.xpose.msk.msra.mxu2 %vm306_vm0, %v286_v6  ;;  %667 = vmatpush.xpose.msk.msra.mxu3 %vm306_vm0, %v286_v6 }
  0x35   : > { %623 = vmatpush.xpose.msk.msra.mxu0 %vm306_vm0, %v285_v7  ;;  %668 = vmatpush.xpose.msk.msra.mxu1 %vm306_vm0, %v285_v7 }
  0x36   : > { %669 = vmatpush.xpose.msk.msra.mxu2 %vm306_vm0, %v285_v7  ;;  %670 = vmatpush.xpose.msk.msra.mxu3 %vm306_vm0, %v285_v7 }
  0x39   : > { %624 = vmatpush.xpose.msk.msra.mxu0 %vm306_vm0, %v284_v8  ;;  %671 = vmatpush.xpose.msk.msra.mxu1 %vm306_vm0, %v284_v8 }
  0x3a   : > { %672 = vmatpush.xpose.msk.msra.mxu2 %vm306_vm0, %v284_v8  ;;  %673 = vmatpush.xpose.msk.msra.mxu3 %vm306_vm0, %v284_v8 }
  0x3d   : > { %625 = vmatpush.xpose.msk.msra.mxu0 %vm306_vm0, %v283_v11  ;;  %674 = vmatpush.xpose.msk.msra.mxu1 %vm306_vm0, %v283_v11 }
  0x3e   : > { %675 = vmatpush.xpose.msk.msra.mxu2 %vm306_vm0, %v283_v11  ;;  %676 = vmatpush.xpose.msk.msra.mxu3 %vm306_vm0, %v283_v11 }
  0x41   : > { %626 = vmatpush.xpose.msk.msra.mxu0 %vm306_vm0, %v282_v13  ;;  %677 = vmatpush.xpose.msk.msra.mxu1 %vm306_vm0, %v282_v13 }
  0x42   : > { %678 = vmatpush.xpose.msk.msra.mxu2 %vm306_vm0, %v282_v13  ;;  %679 = vmatpush.xpose.msk.msra.mxu3 %vm306_vm0, %v282_v13 }
  0x45   : > { %627 = vmatpush.xpose.msk.msra.mxu0 %vm306_vm0, %v281_v16  ;;  %680 = vmatpush.xpose.msk.msra.mxu1 %vm306_vm0, %v281_v16 }
  0x46   : > { %681 = vmatpush.xpose.msk.msra.mxu2 %vm306_vm0, %v281_v16  ;;  %682 = vmatpush.xpose.msk.msra.mxu3 %vm306_vm0, %v281_v16 }
  0x49   : > { %628 = vmatpush.xpose.msk.msra.mxu0 %vm306_vm0, %v280_v17  ;;  %683 = vmatpush.xpose.msk.msra.mxu1 %vm306_vm0, %v280_v17 }
  0x4a   : > { %684 = vmatpush.xpose.msk.msra.mxu2 %vm306_vm0, %v280_v17  ;;  %685 = vmatpush.xpose.msk.msra.mxu3 %vm306_vm0, %v280_v17 }
  0x4d   : > { %629 = vmatpush.xpose.msk.msra.mxu0 %vm306_vm0, %v279_v18  ;;  %686 = vmatpush.xpose.msk.msra.mxu1 %vm306_vm0, %v279_v18 }
  0x4e   : > { %687 = vmatpush.xpose.msk.msra.mxu2 %vm306_vm0, %v279_v18  ;;  %688 = vmatpush.xpose.msk.msra.mxu3 %vm306_vm0, %v279_v18 }
  0x51   : > { %630 = vmatpush.xpose.msk.msra.mxu0 %vm306_vm0, %v278_v19  ;;  %689 = vmatpush.xpose.msk.msra.mxu1 %vm306_vm0, %v278_v19 }
  0x52   : > { %690 = vmatpush.xpose.msk.msra.mxu2 %vm306_vm0, %v278_v19  ;;  %691 = vmatpush.xpose.msk.msra.mxu3 %vm306_vm0, %v278_v19 }
  0x55   : > { %631 = vmatpush.xpose.msk.msra.mxu0 %vm306_vm0, %v277_v20  ;;  %692 = vmatpush.xpose.msk.msra.mxu1 %vm306_vm0, %v277_v20 }
  0x56   : > { %693 = vmatpush.xpose.msk.msra.mxu2 %vm306_vm0, %v277_v20  ;;  %694 = vmatpush.xpose.msk.msra.mxu3 %vm306_vm0, %v277_v20 }
  0x58   : > { %632 = vmatmul.msk.f32.vlgmr.msra.gmra.mxu0 %vm306_vm0, %v294_v21  ;;  %634 = vmatmul.msk.f32.vlgmr.msra.gmra.mxu1 %vm306_vm0, %v296_v22  ;;  %v293_v21 = vld [vmem:[%s269_s30] sm:$0x1] }
  0x59   : > { %636 = vmatmul.msk.f32.vlgmr.msra.gmra.mxu2 %vm306_vm0, %v298_v23  ;;  %638 = vmatmul.msk.f32.vlgmr.msra.gmra.mxu3 %vm306_vm0, %v300_v24 }
  0x60   : > { %633 = vmatmul.msk.f32.gmra.mxu0 %vm306_vm0, %v295_v25  ;;  %635 = vmatmul.msk.f32.gmra.mxu1 %vm306_vm0, %v297_v26  ;;  %v490_v25 = vld [vmem:[#allocation2] sm:$0x1] }
  0x61   : > { %637 = vmatmul.msk.f32.gmra.mxu2 %vm306_vm0, %v299_v27  ;;  %639 = vmatmul.msk.f32.gmra.mxu3 %vm306_vm0, %v301_v28 }
  0x88   : > { %v433_v29 = vpop.permute.xlu1 %432  ;;  %v423_v30 = vpop.permute.xlu0 %422 }
  0x91   : > { %v438_v37 = vpop.permute.xlu1 %437  ;;  %v428_v38 = vpop.permute.xlu0 %427 }
  0xd5   : > { %v396_v31 = vpop.f32.mrf.mxu0  ;;  %v402_v32 = vpop.f32.mrf.mxu1 }
  0xd6   : > { %v440_v33 = vadd.f32 %v423_v30, %v396_v31  ;;  %v442_v34 = vadd.f32 %v433_v29, %v402_v32 }
  0xd8   : > { %v444_v35 = vmul.f32 0.5, %v440_v33  ;;  %v446_v36 = vmul.f32 0.5, %v442_v34 }
  0xda   : > { %755 = vtanh.f32 %v444_v35 }
  0xdb   : > { %757 = vtanh.f32 %v446_v36 }
  0xdc   : > { %v408_v39 = vpop.f32.mrf.mxu2  ;;  %v414_v40 = vpop.f32.mrf.mxu3 }
  0xdd   : > { %v399_v41 = vpop.f32.mrf.mxu0  ;;  %v405_v42 = vpop.f32.mrf.mxu1  ;;  %v640_v53 = vadd.f32 -0.5, %v408_v39  ;;  %v642_v54 = vadd.f32 -0.5, %v414_v40 }
  0xde   : > { %v441_v43 = vadd.f32 %v428_v38, %v399_v41  ;;  %v443_v44 = vadd.f32 %v438_v37, %v405_v42 }
  0xe0   : > { %v756_v45 = vpop.eup %755  ;;  %v445_v46 = vmul.f32 0.5, %v441_v43  ;;  %v447_v47 = vmul.f32 0.5, %v443_v44 }
  0xe1   : > { %v758_v48 = vpop.eup %757  ;;  %v452_v49 = vadd.f32 1.0, %v756_v45 }
  0xe2   : > { %v454_v50 = vadd.f32 1.0, %v758_v48  ;;  %759 = vtanh.f32 %v445_v46 }
  0xe3   : > { %761 = vtanh.f32 %v447_v47  ;;  %v456_v51 = vmul.f32 0.5, %v452_v49 }
  0xe4   : > { %v458_v52 = vmul.f32 0.5, %v454_v50  ;;  %v411_v55 = vpop.f32.mrf.mxu2  ;;  %v417_v56 = vpop.f32.mrf.mxu3 }
  0xe5   : > { %v641_v60 = vadd.f32 -0.5, %v411_v55  ;;  %v464_v62 = vmul.f32 %v640_v53, %v456_v51  ;;  %v643_v0 = vadd.f32 -0.5, %v417_v56 }
  0xe6   : > { %v466_v63 = vmul.f32 %v642_v54, %v458_v52 }
  0xe7   : > { %v468_v4 = vadd.f32 1.0, %v464_v62 }
  0xe8   : > { %v760_v57 = vpop.eup %759  ;;  %v470_v5 = vadd.f32 1.0, %v466_v63 }
  0xe9   : > { %v762_v58 = vpop.eup %761  ;;  %v453_v59 = vadd.f32 1.0, %v760_v57 }
  0xea   : > { %v455_v61 = vadd.f32 1.0, %v762_v58  ;;  %v472_v10 = vmul.f32 %v470_v5, %v468_v4 }
  0xeb   : > { %v457_v1 = vmul.f32 0.5, %v453_v59 }
  0xec   : > { %v459_v2 = vmul.f32 0.5, %v455_v61 }
  0xed   : > { %v465_v3 = vmul.f32 %v641_v60, %v457_v1 }
  0xee   : > { %v467_v6 = vmul.f32 %v643_v0, %v459_v2 }
  0xef   : > { %v469_v7 = vadd.f32 1.0, %v465_v3 }
  0xf0   : > { %v471_v8 = vadd.f32 1.0, %v467_v6 }
  0xf2   : > { %v473_v11 = vmul.f32 %v471_v8, %v469_v7 }
  0xf4   : > { %v474_v12 = vmul.f32 %v473_v11, %v472_v10 }
  0xf6   : > { %v476_v13 = vrot.slane %v474_v12, 4 }
  0xf8   : > { %v478_v14 = vmul.f32 %v476_v13, %v474_v12 }
  0xfa   : > { %v480_v15 = vrot.slane %v478_v14, 2 }
  0xfc   : > { %v482_v16 = vmul.f32 %v480_v15, %v478_v14 }
  0xfe   : > { %v484_v17 = vrot.slane %v482_v16, 1 }
 0x100   : > { %v486_v18 = vmul.f32 %v484_v17, %v482_v16 }
 0x102   : > { %v487_v19 = vmax.f32 %v486_v18, 1e-30 }
 0x104   : > { %763 = vlog2.f32 %v487_v19 }
 0x10a   : > { %v764_v20 = vpop.eup %763 }
 0x10b   : > { %v489_v22 = vmul.f32 0.6931472, %v764_v20 }
 0x10d   : > { %v491_v23 = vmul.f32 %v489_v22, %v293_v21 }
 0x10f   : > { %v493_v24 = vsel %vm492_vm2, %v491_v23, 0.0 }
 0x110   : > { %494 = vadd.xlane.f32.xlu2 %v493_v24 }
 0x183   : > { %v495_v26 = vpop.xlane.xlu2 %494 }
 0x184   : > { %v496_v27 = vadd.f32 %v495_v26, %v490_v25 }
 0x186   : > { %498 = vst.msk [vmem:[#allocation2] sm:$0x1] %vm275_vm1, %v496_v27 }
 0x18d   : > { %v502_v28 = vld [vmem:[#allocation2] sm:$0x1] }
 0x18e   : > { %505 = vperm.xlu2 %754, %v502_v28  }
 0x1e8   : > { %v506_v29 = vpop.permute.xlu2 %505 }
 0x1e9   : > { %v508_v30 = vperm.slane %v506_v29, 0 }
 0x1eb   : > { %509 = vst [vmem:[%s250_s8] sm:$0x1] %v508_v30 }
 0x1ec   : > { %792 = shalt.err (!%p789_p5)
}
 0x1ed   : > { %695 = dma.vmem_to_hbm [thread:$0]  (%p912_p4), %s523_s9, 16, %s525_s10, %s511_s11  }
 0x1ee PF: > { %p701_p6 = scmp.ge.s32.totalorder %s843_s20, 2  ;;  %s536_s26 = sand.u32 1, %s823_s15  }
 0x1ef   : > { %s537_s30 = scalar_lea.sflag [#allocation4], %s536_s26 }
 0x1f0   : > { %p698_p7 = pnand %p701_p6, %p919_p8 }
 0x1f2   : > { %p699_p9 = pneg %p698_p7 }
 0x1f4   : > { %818 = dma.done.wait (%p699_p9), %s537_s30, 16  }
 0x1f5   : > { %820 = vsyncadd (%p699_p9), %s537_s30, 4294967280  ;;  %s17_s20 = sadd.s32 1, %s843_s20   ;;  %s1111_s15 = smov %s827_s16 }
 0x1f6   : > { %p14_p10 = scmp.ge.s32.totalorder %s17_s20, 4   ;;  %s1112_s16 = smov %s831_s17 }
 0x1f7   : > { %s1113_s17 = smov %s925_s28  ;;  %s1114_s18 = smov %s839_s19 }
 0x1f8   : > { %s1115_s19 = smov %s1117_s23  ;;  %16 = sbr.rel (!%p14_p10) target bundleno = 4 (0x4), region = 82 }
 0x1fd   :  { %542 = vsyncpa [#allocation4], 1 }
 0x1fe   :  { %544 = vsyncpa [#allocation4 + $0x1], 1 }

</bundles_post_ra>
